<compile_context>
chip_gen: v7x
topology: tpu7x:2x2x1
jax: 0.10.0
libtpu: 0.0.40
codegen_flags: <defaults>
</compile_context>

<pallas_src>
import math
import functools

import jax
import jax.numpy as jnp
from jax import lax
from jax.experimental import pallas as pl
from jax.experimental.pallas import tpu as pltpu


# ----------------------------------------------------------------------------
# Path 1: resident-table (table lives in VMEM, gather via one-hot MXU matmul)
# ----------------------------------------------------------------------------
def _make_resident_kernel(V: int, scale: float):
    def kernel(ids_ref, emb_ref, out_ref):
        # ids_ref : (T, 1) int32 tile of token ids (VMEM)
        # emb_ref : (V, D) embedding table, resident in VMEM (constant block)
        # out_ref : (T, D) output tile (VMEM, auto-pipelined)
        T = ids_ref.shape[0]
        ids_col = ids_ref[...]                                    # (T, 1) int32
        lanes = lax.broadcasted_iota(jnp.int32, (T, V), 1)        # vocab id per lane
        onehot = jnp.where(ids_col == lanes, 1.0, 0.0).astype(emb_ref.dtype)
        gathered = jnp.dot(onehot, emb_ref[...],
                           preferred_element_type=jnp.float32)    # (T, D) f32
        out_ref[...] = (gathered * scale).astype(out_ref.dtype)
    return kernel


def _embed_resident(flat_ids, emb_table, *, T, n_steps, scale, vmem_limit):
    V, D = emb_table.shape
    N_pad = n_steps * T
    ids_col = flat_ids.reshape(N_pad, 1)
    return pl.pallas_call(
        _make_resident_kernel(V, scale),
        out_shape=jax.ShapeDtypeStruct((N_pad, D), emb_table.dtype),
        grid=(n_steps,),
        in_specs=[
            pl.BlockSpec((T, 1), lambda i: (i, 0)),      # ids tile
            pl.BlockSpec((V, D), lambda i: (0, 0)),      # full table, fetched once
        ],
        out_specs=pl.BlockSpec((T, D), lambda i: (i, 0)),
        compiler_params=pltpu.CompilerParams(
            dimension_semantics=("parallel",),           # tiles independent
            vmem_limit_bytes=vmem_limit,
        ),
    )(ids_col, emb_table)


# ----------------------------------------------------------------------------
# Path 2: HBM gather with cross-step double-buffered row DMAs
# ----------------------------------------------------------------------------
def _make_gather_kernel(T: int, D: int, scale: float, n_steps: int):
    def kernel(ids_ref, emb_hbm, out_ref, buf, sems):
        # ids_ref : (N_pad,) int32, scalar-prefetched into SMEM
        # emb_hbm : (V, D) raw HBM ref (memory_space=pl.ANY)
        # out_ref : (T, D) auto-pipelined output tile (VMEM)
        # buf     : (2, T, D) VMEM scratch (double-buffered gathered rows)
        # sems    : (2,) DMA semaphores, one per slot (shared by all T copies)
        i = pl.program_id(0)
        slot = i % 2
        nxt_slot = (i + 1) % 2

        def issue_tile(tile_idx, dst_slot):
            base = tile_idx * T

            def issue_one(t):
                row = ids_ref[base + t]
                pltpu.make_async_copy(
                    emb_hbm.at[pl.ds(row, 1)],          # (1, D) row in HBM
                    buf.at[dst_slot, pl.ds(t, 1)],      # (1, D) row slot in VMEM
                    sems.at[dst_slot],
                ).start()

            if T <= 64:
                for t in range(T):                      # unrolled at trace time
                    issue_one(t)
            else:
                def body(t, carry):
                    issue_one(t)
                    return carry
                lax.fori_loop(0, T, body, 0)

        # Prologue: the very first step starts its own gathers.
        @pl.when(i == 0)
        def _():
            issue_tile(0, 0)

        # Prefetch the NEXT tile's rows into the other slot BEFORE waiting on
        # the current slot: ids are read from SMEM ahead of the wait and the
        # whole next-tile gather overlaps this step's compute + output DMA.
        @pl.when(i + 1 < n_steps)
        def _():
            issue_tile(i + 1, nxt_slot)

        # Aggregate wait: every row copy of this slot signalled the same DMA
        # semaphore (DMA semaphores count bytes), so one (T, D)-shaped wait
        # drains all T row copies at once.
        pltpu.make_async_copy(buf.at[slot], buf.at[slot], sems.at[slot]).wait()

        out_ref[...] = (buf[slot] * scale).astype(out_ref.dtype)

    return kernel


def _embed_hbm_gather(flat_ids, emb_table, *, T, n_steps, scale, vmem_limit):
    V, D = emb_table.shape
    N_pad = n_steps * T
    grid_spec = pltpu.PrefetchScalarGridSpec(
        num_scalar_prefetch=1,                           # flat ids -> SMEM
        grid=(n_steps,),
        in_specs=[pl.BlockSpec(memory_space=pl.ANY)],    # table stays in HBM
        out_specs=pl.BlockSpec((T, D), lambda i, ids: (i, 0)),
        scratch_shapes=[
            pltpu.VMEM((2, T, D), emb_table.dtype),      # double-buffered rows
            pltpu.SemaphoreType.DMA((2,)),               # one sem per slot
        ],
    )
    return pl.pallas_call(
        _make_gather_kernel(T, D, scale, n_steps),
        out_shape=jax.ShapeDtypeStruct((N_pad, D), emb_table.dtype),
        grid_spec=grid_spec,
        compiler_params=pltpu.CompilerParams(
            # Cross-step prefetch carries scratch state between steps, so the
            # token axis must stay in-order on one core.
            # TODO(synk): a v7x 2-core split would need a per-core prologue.
            dimension_semantics=("arbitrary",),
            vmem_limit_bytes=vmem_limit,
        ),
    )(flat_ids, emb_table)


# ----------------------------------------------------------------------------
# Wrapper: InputText.forward
# ----------------------------------------------------------------------------
def input_text_forward(ids: jax.Array, emb_table: jax.Array, *,
                       tokens_per_step: int = 256,
                       force_hbm_gather: bool = False,
                       resident_table_bytes: int = 4 * 1024 * 1024) -> jax.Array:
    """Pallas equivalent of InputText.forward: embedding(ids) * sqrt(D)."""
    B, S = ids.shape
    V, D = emb_table.shape
    N = B * S
    itemsize = jnp.dtype(emb_table.dtype).itemsize
    scale = float(math.sqrt(float(D)))

    # Clamp untrusted ids (PyTorch nn.Embedding would raise; we clamp).
    flat_ids = jnp.clip(ids.reshape(N).astype(jnp.int32), 0, V - 1)

    table_bytes = V * D * itemsize
    use_resident = (not force_hbm_gather) and table_bytes <= resident_table_bytes

    def _round8(x):  # floor to multiple of 8, at least 8
        return max(8, (int(x) // 8) * 8)

    # Token-tile size T (multiple of 8 sublanes).
    T = _round8(min(tokens_per_step, -(-N // 8) * 8))
    if use_resident:
        # Keep the (T, V) one-hot intermediate small (<= ~2 MiB of f32).
        T = min(T, _round8((2 << 20) // max(V * 4, 1)))
    else:
        # Keep 2x(T,D) row buffers + 2x(T,D) output buffers under ~24 MiB
        # (v7x only has 64 MiB physical VMEM).
        T = min(T, _round8((24 << 20) // max(16 * D * itemsize, 1)))
    T = max(8, T)

    n_steps = -(-N // T)
    N_pad = n_steps * T
    if N_pad != N:
        # Pad with id 0 (valid row); padded rows are sliced off below.
        flat_ids = jnp.concatenate([flat_ids, jnp.zeros((N_pad - N,), jnp.int32)])

    # Explicit VMEM budget (v5e's default scoped limit is only 16 MiB).
    if use_resident:
        need = 2 * table_bytes + 2 * T * D * itemsize + T * V * 4 + (2 << 20)
    else:
        need = 6 * T * D * itemsize + (2 << 20)
    vmem_limit = int(min(max(need, 8 << 20), 32 << 20))

    if use_resident:
        out_flat = _embed_resident(flat_ids, emb_table, T=T, n_steps=n_steps,
                                   scale=scale, vmem_limit=vmem_limit)
    else:
        out_flat = _embed_hbm_gather(flat_ids, emb_table, T=T, n_steps=n_steps,
                                     scale=scale, vmem_limit=vmem_limit)

    return out_flat[:N].reshape(B, S, D)


if __name__ == "__main__":
    # Small shapes consistent with the module.
    B, S = 2, 8            # batch, sequence length of token ids
    vocab_size = 256
    dim_input = 128        # lane-friendly hidden size

    key = jax.random.PRNGKey(0)
    k_emb, k_ids = jax.random.split(key)

    # nn.Embedding default init: N(0, 1).
    emb_table = jax.random.normal(k_emb, (vocab_size, dim_input), dtype=jnp.float32)
    ids = jax.random.randint(k_ids, (B, S), minval=0, maxval=vocab_size,
                             dtype=jnp.int32)

    ref = jnp.take(emb_table, ids, axis=0) * math.sqrt(float(dim_input))

    # Path 1: resident-table fast path (selected automatically at this shape).
    out_resident = jax.block_until_ready(input_text_forward(ids, emb_table))
    assert out_resident.shape == (B, S, dim_input)
    assert jnp.allclose(out_resident, ref, atol=1e-5, rtol=1e-5)

    # Path 2: HBM-gather path with cross-step double-buffered prefetch
    # (forced here so both code paths are compiled and verified).
    out_gather = jax.block_until_ready(
        input_text_forward(ids, emb_table, tokens_per_step=8,
                           force_hbm_gather=True))
    assert out_gather.shape == (B, S, dim_input)
    assert jnp.allclose(out_gather, ref, atol=1e-5, rtol=1e-5)

    print("KERNEL_OK")
</pallas_src>

<mosaic_0001>
module attributes {stable_mosaic.version = 11 : i64} {
  func.func @kernel(%arg0: i32, %arg1: memref<16x1xi32, #tpu.memory_space<vmem>>, %arg2: memref<256x128xf32, #tpu.memory_space<vmem>>, %arg3: memref<16x128xf32, #tpu.memory_space<vmem>>) attributes {dimension_semantics = [#tpu.dimension_semantics<parallel>], iteration_bounds = array<i64: 1>, scalar_prefetch = 0 : i64, scratch_operands = 0 : i64, tpu.core_type = #tpu.core_type<tc>, window_params = [{transform_indices = @transform_0, window_bounds = array<i64: 16, 1>}, {pipeline_mode = #tpu.pipeline_mode<synchronous>, transform_indices = @transform_1, window_bounds = array<i64: 256, 128>}, {transform_indices = @transform_2, window_bounds = array<i64: 16, 128>}]} {
    %c0 = arith.constant 0 : index
    %c0_0 = arith.constant 0 : index
    %0 = vector.load %arg1[%c0, %c0_0] : memref<16x1xi32, #tpu.memory_space<vmem>>, vector<16x1xi32>
    %1 = tpu.iota {dimensions = array<i32: 1>} : vector<16x256xi32>
    %2 = vector.broadcast %0 : vector<16x1xi32> to vector<16x256xi32>
    %3 = arith.cmpi eq, %2, %1 : vector<16x256xi32>
    %cst = arith.constant 1.000000e+00 : f32
    %cst_1 = arith.constant 0.000000e+00 : f32
    %4 = vector.broadcast %cst : f32 to vector<16x256xf32>
    %5 = vector.broadcast %cst_1 : f32 to vector<16x256xf32>
    %6 = arith.select %3, %4, %5 : vector<16x256xi1>, vector<16x256xf32>
    %c0_2 = arith.constant 0 : index
    %c0_3 = arith.constant 0 : index
    %7 = vector.load %arg2[%c0_2, %c0_3] : memref<256x128xf32, #tpu.memory_space<vmem>>, vector<256x128xf32>
    %cst_4 = arith.constant dense<0.000000e+00> : vector<16x128xf32>
    %8 = tpu.matmul %6, %7, %cst_4 {dimension_numbers = #tpu.dot_dimension_numbers<[1], [0], [0], [1], [0, 0, 1, 1], [], []>} : vector<16x256xf32>, vector<256x128xf32>, vector<16x128xf32> -> vector<16x128xf32>
    %cst_5 = arith.constant 11.3137083 : f32
    %9 = vector.broadcast %cst_5 : f32 to vector<16x128xf32>
    %10 = arith.mulf %8, %9 : vector<16x128xf32>
    %c0_6 = arith.constant 0 : index
    %c0_7 = arith.constant 0 : index
    %11 = vector.load %arg3[%c0_6, %c0_7] : memref<16x128xf32, #tpu.memory_space<vmem>>, vector<16x128xf32>
    tpu.vector_store %arg3[%c0_6, %c0_7], %10 {strides = array<i32>} : memref<16x128xf32, #tpu.memory_space<vmem>>, vector<16x128xf32>,
    return
  }
  func.func @transform_0(%arg0: i32) -> (i32, i32) {
    %c0_i32 = arith.constant 0 : i32
    %c0_i32_0 = arith.constant 0 : i32
    return %arg0, %c0_i32 : i32, i32
  }
  func.func @transform_1(%arg0: i32) -> (i32, i32) {
    %c0_i32 = arith.constant 0 : i32
    %c0_i32_0 = arith.constant 0 : i32
    %c0_i32_1 = arith.constant 0 : i32
    return %c0_i32, %c0_i32_0 : i32, i32
  }
  func.func @transform_2(%arg0: i32) -> (i32, i32) {
    %c0_i32 = arith.constant 0 : i32
    %c0_i32_0 = arith.constant 0 : i32
    return %arg0, %c0_i32 : i32, i32
  }
}

</mosaic_0001>

<bundles_post_ra>
// kernel: tpu_custom_call.1
= control target key start
LH: loop header
LB: loop body
LE: loop exit
PB: predicated region body
PF: predicated region fallthrough
CT: control target
= control target key end

     0   :  { %7 = vsyncpa [#allocation3], 0  ;;  %s375_s0 = inlined_call_operand.vmem [shape: s32[16,1], index: 0, kind: input, shape index: {}]   ;;  %s376_s1 = inlined_call_operand.hbm [shape: f32[256,128], index: 1, kind: input, shape index: {}]   ;;  %s377_s2 = inlined_call_operand.hbm [shape: f32[16,128], index: 2, kind: output, shape index: {}]  }
   0x1   :  { %8 = vsyncpa [#allocation4], 0  ;;  %s318_s9 = smov [#allocation2]   ;;  %s270_s13 = scalar_lea.hbm %s376_s1, 4096 }
   0x2   :  { %s16_s10 = sshll.u32 %s318_s9, 4  ;;  %p271_p0 = scmp.ne.s32.totalorder %s376_s1, %s270_s13  ;;  %s17_s10 = int_to_ptr.vmem [resolvable:$true] %s16_s10 }
   0x3   :  { %p274_p1 = scmp.lt.u32.totalorder %s270_s13, %s376_s1 }
   0x5   :  { %p276_p2 = pnand %p274_p1, %p271_p0 }
   0x7   :  { %279 = shalt.err (!%p276_p2)
}
   0x8   :  { %s280_s18 = scalar_lea.vmem %s17_s10, 4096  ;;  %p285_p4 = scmp.lt.s32.totalorder %s17_s10, %s17_s10 }
   0x9   :  { %p281_p3 = scmp.ne.s32.totalorder %s17_s10, %s280_s18  ;;  %p286_p5 = scmp.lt.s32.totalorder %s280_s18, %s280_s18 }
   0xb   :  { %p287_p6 = por %p286_p5, %p285_p4 }
   0xd   :  { %p288_p7 = pnand %p287_p6, %p281_p3 }
   0xf   :  { %291 = shalt.err (!%p288_p7)
}
  0x10   :  { %s319_s19 = smov 128   ;;  %s320_s20 = smov 8  }
  0x11   :  { %22 = dma.hbm_to_vmem [thread:$0]  %s376_s1, 4096, %s17_s10, [#allocation3], %s319_s19, %s319_s19, %s320_s20  }
  0x12   :  { %314 = dma.done.wait [#allocation3], 4096  }
  0x13   :  { %315 = vsyncadd [#allocation3], 4294963200  ;;  %v321_v0 = vmov 0   ;;  %v26_v1 = vld [vmem:[%s375_s0] sm:$0xff]  ;;  %v27_v2 = vld [vmem:[%s375_s0 + $0x8] sm:$0xff]  ;;  %v28_v51 = vlaneseq  ;;  %v322_v55 = vmov 1.0  }
  0x14   :  { %269 = vset.pattern.permute.xlu0 %v321_v0  ;;  %v61_v3 = vld [vmem:[#allocation2 + $0x80] sm:$0xff]  ;;  %v62_v4 = vld [vmem:[#allocation2 + $0x88] sm:$0xff]  ;;  %v63_v9 = vld [vmem:[#allocation2 + $0x90] sm:$0xff]  ;;  %s323_s0 = smov [#allocation5]  }
  0x15   :  { %32 = vperm.xlu0 %269, %v26_v1   ;;  %v45_v5 = vld [vmem:[#allocation2] sm:$0xff]  ;;  %v46_v6 = vld [vmem:[#allocation2 + $0x8] sm:$0xff]  ;;  %v215_v7 = vpack.c.bf16 %v62_v4, %v61_v3  ;;  %v64_v10 = vld [vmem:[#allocation2 + $0x98] sm:$0xff]  ;;  %v29_v52 = vand.u32 127, %v28_v51  ;;  %s161_s1 = sshll.u32 %s323_s0, 4  ;;  %s162_s1 = int_to_ptr.vmem [resolvable:$true] %s161_s1 }
  0x16   :  { %v217_v8 = vpack.c.bf16 %v46_v6, %v45_v5  ;;  %v47_v11 = vld [vmem:[#allocation2 + $0x10] sm:$0xff]  ;;  %v219_v12 = vpack.c.bf16 %v64_v10, %v63_v9  ;;  %v48_v13 = vld [vmem:[#allocation2 + $0x18] sm:$0xff]  ;;  %v65_v14 = vld [vmem:[#allocation2 + $0xa0] sm:$0xff]  ;;  %s292_s27 = scalar_lea.vmem %s162_s1, 256  ;;  %p297_p9 = scmp.lt.s32.totalorder %s162_s1, %s162_s1 }
  0x17   :  { %v66_v15 = vld [vmem:[#allocation2 + $0xa8] sm:$0xff]  ;;  %216 = vmatprep.subr.bf16.mxu0 %v215_v7  ;;  %247 = vmatprep.subr.bf16.mxu1 %v215_v7  ;;  %v221_v16 = vpack.c.bf16 %v48_v13, %v47_v11  ;;  %v49_v18 = vld [vmem:[#allocation2 + $0x20] sm:$0xff]  ;;  %v67_v20 = vld [vmem:[#allocation2 + $0xb0] sm:$0xff]  ;;  %v30_v53 = vadd.s32 128, %v29_v52  ;;  %p293_p8 = scmp.ne.s32.totalorder %s162_s1, %s292_s27  ;;  %p298_p10 = scmp.lt.s32.totalorder %s292_s27, %s292_s27 }
  0x18   :  { %218 = vmatpush3.bf16.msra.mxu0 %v217_v8  ;;  %255 = vmatpush3.bf16.msra.mxu1 %v217_v8  ;;  %v223_v17 = vpack.c.bf16 %v66_v15, %v65_v14  ;;  %v50_v19 = vld [vmem:[#allocation2 + $0x28] sm:$0xff]  ;;  %v68_v21 = vld [vmem:[#allocation2 + $0xb8] sm:$0xff]  ;;  %v51_v24 = vld [vmem:[#allocation2 + $0x30] sm:$0xff] }
  0x19   :  { %35 = vperm.xlu0 %269, %v27_v2   ;;  %220 = vmatprep.subr.bf16.mxu0 %v219_v12  ;;  %v225_v22 = vpack.c.bf16 %v50_v19, %v49_v18  ;;  %v227_v23 = vpack.c.bf16 %v68_v21, %v67_v20  ;;  %v52_v25 = vld [vmem:[#allocation2 + $0x38] sm:$0xff]  ;;  %v69_v26 = vld [vmem:[#allocation2 + $0xc0] sm:$0xff]  ;;  %v70_v27 = vld [vmem:[#allocation2 + $0xc8] sm:$0xff]  ;;  %p299_p11 = por %p298_p10, %p297_p9 }
  0x1a   :  { %248 = vmatprep.subr.bf16.mxu1 %v219_v12  ;;  %v229_v28 = vpack.c.bf16 %v52_v25, %v51_v24  ;;  %v231_v29 = vpack.c.bf16 %v70_v27, %v69_v26  ;;  %v53_v30 = vld [vmem:[#allocation2 + $0x40] sm:$0xff]  ;;  %v54_v31 = vld [vmem:[#allocation2 + $0x48] sm:$0xff]  ;;  %v71_v32 = vld [vmem:[#allocation2 + $0xd0] sm:$0xff] }
  0x1b   :  { %v72_v33 = vld [vmem:[#allocation2 + $0xd8] sm:$0xff]  ;;  %v233_v34 = vpack.c.bf16 %v54_v31, %v53_v30  ;;  %v55_v36 = vld [vmem:[#allocation2 + $0x50] sm:$0xff]  ;;  %v73_v38 = vld [vmem:[#allocation2 + $0xe0] sm:$0xff]  ;;  %p300_p12 = pnand %p299_p11, %p293_p8 }
  0x1c   :  { %222 = vmatpush3.bf16.msra.mxu0 %v221_v16  ;;  %256 = vmatpush3.bf16.msra.mxu1 %v221_v16  ;;  %v235_v35 = vpack.c.bf16 %v72_v33, %v71_v32  ;;  %v56_v37 = vld [vmem:[#allocation2 + $0x58] sm:$0xff]  ;;  %v74_v39 = vld [vmem:[#allocation2 + $0xe8] sm:$0xff]  ;;  %v57_v42 = vld [vmem:[#allocation2 + $0x60] sm:$0xff] }
  0x1d   :  { %224 = vmatprep.subr.bf16.mxu0 %v223_v17  ;;  %249 = vmatprep.subr.bf16.mxu1 %v223_v17  ;;  %v237_v40 = vpack.c.bf16 %v56_v37, %v55_v36  ;;  %v239_v41 = vpack.c.bf16 %v74_v39, %v73_v38  ;;  %v58_v43 = vld [vmem:[#allocation2 + $0x68] sm:$0xff]  ;;  %v75_v44 = vld [vmem:[#allocation2 + $0xf0] sm:$0xff]  ;;  %v76_v45 = vld [vmem:[#allocation2 + $0xf8] sm:$0xff] }
  0x1e   :  { %v241_v46 = vpack.c.bf16 %v58_v43, %v57_v42  ;;  %v243_v47 = vpack.c.bf16 %v76_v45, %v75_v44  ;;  %v59_v48 = vld [vmem:[#allocation2 + $0x70] sm:$0xff]  ;;  %v60_v49 = vld [vmem:[#allocation2 + $0x78] sm:$0xff] }
  0x1f   :  { %v245_v50 = vpack.c.bf16 %v60_v49, %v59_v48 }
  0x20   :  { %226 = vmatpush3.bf16.msra.mxu0 %v225_v22  ;;  %257 = vmatpush3.bf16.msra.mxu1 %v225_v22 }
  0x21   :  { %228 = vmatprep.subr.bf16.mxu0 %v227_v23  ;;  %250 = vmatprep.subr.bf16.mxu1 %v227_v23 }
  0x24   :  { %230 = vmatpush3.bf16.msra.mxu0 %v229_v28  ;;  %258 = vmatpush3.bf16.msra.mxu1 %v229_v28 }
  0x25   :  { %232 = vmatprep.subr.bf16.mxu0 %v231_v29  ;;  %251 = vmatprep.subr.bf16.mxu1 %v231_v29 }
  0x28   :  { %234 = vmatpush3.bf16.msra.mxu0 %v233_v34  ;;  %259 = vmatpush3.bf16.msra.mxu1 %v233_v34 }
  0x29   :  { %236 = vmatprep.subr.bf16.mxu0 %v235_v35  ;;  %252 = vmatprep.subr.bf16.mxu1 %v235_v35 }
  0x2c   :  { %238 = vmatpush3.bf16.msra.mxu0 %v237_v40  ;;  %260 = vmatpush3.bf16.msra.mxu1 %v237_v40 }
  0x2d   :  { %240 = vmatprep.subr.bf16.mxu0 %v239_v41  ;;  %253 = vmatprep.subr.bf16.mxu1 %v239_v41 }
  0x30   :  { %242 = vmatpush3.bf16.msra.mxu0 %v241_v46  ;;  %261 = vmatpush3.bf16.msra.mxu1 %v241_v46 }
  0x31   :  { %244 = vmatprep.subr.bf16.mxu0 %v243_v47  ;;  %254 = vmatprep.subr.bf16.mxu1 %v243_v47 }
  0x34   :  { %246 = vmatpush3.bf16.msra.mxu0 %v245_v50  ;;  %262 = vmatpush3.bf16.msra.mxu1 %v245_v50 }
  0x94   :  { %v33_v54 = vpop.permute.xlu0 %32 }
  0x95   :  { %vm37_vm0 = vcmp.eq.s32.totalorder %v33_v54, %v29_v52  ;;  %vm38_vm1 = vcmp.eq.s32.totalorder %v33_v54, %v30_v53 }
  0x96   :  { %173 = vmatprep.mubr.msk.f32.mxu0 %vm38_vm1, %v322_v55 }
  0x97   :  { %174 = vmatmul.mubr.msk.f32.vlgmr.msra.gmra.mrb[0].mxu0 %vm37_vm0, %v322_v55 }
  0x98   :  { %v36_v56 = vpop.permute.xlu0 %35 }
  0x99   :  { %vm39_vm2 = vcmp.eq.s32.totalorder %v36_v56, %v29_v52  ;;  %vm40_vm3 = vcmp.eq.s32.totalorder %v36_v56, %v30_v53 }
  0x9a   :  { %175 = vmatprep.mubr.msk.f32.mxu1 %vm40_vm3, %v322_v55 }
  0x9b   :  { %176 = vmatmul.mubr.msk.f32.vlgmr.msra.gmra.mrb[0].mxu1 %vm39_vm2, %v322_v55 }
 0x16a   :  { %v209_v57 = vpop.f32.mrb[0].mxu0 }
 0x16b   :  { %v210_v58 = vpop.f32.mrb[1].mxu0 }
 0x16c   :  { %v211_v59 = vadd.f32 %v210_v58, %v209_v57 }
 0x16e   :  { %v152_v60 = vmul.f32 11.313708, %v211_v59  ;;  %v212_v61 = vpop.f32.mrb[0].mxu1 }
 0x16f   :  { %v213_v62 = vpop.f32.mrb[1].mxu1 }
 0x170   :  { %154 = vst [vmem:[#allocation5] sm:$0xff] %v152_v60  ;;  %v214_v63 = vadd.f32 %v213_v62, %v212_v61 }
 0x172   :  { %v153_v0 = vmul.f32 11.313708, %v214_v63 }
 0x174   :  { %155 = vst [vmem:[#allocation5 + $0x8] sm:$0xff] %v153_v0 }
 0x175   :  { %303 = shalt.err (!%p300_p12)
}
 0x176   :  { %s304_s30 = scalar_lea.hbm %s377_s2, 256 }
 0x177   :  { %p305_p13 = scmp.ne.s32.totalorder %s377_s2, %s304_s30  ;;  %p308_p0 = scmp.lt.u32.totalorder %s304_s30, %s377_s2 }
 0x179   :  { %p310_p1 = pnand %p308_p0, %p305_p13 }
 0x17b   :  { %313 = shalt.err (!%p310_p1)
}
 0x17c   :  { %167 = dma.vmem_to_hbm [thread:$0]  %s162_s1, 256, %s377_s2, [#allocation4], %s319_s19, %s319_s19, %s320_s20  }
 0x17d   :  { %316 = dma.done.wait [#allocation4], 256  }
 0x17e   :  { %317 = vsyncadd [#allocation4], 4294967040 }
 0x17f   :  { %171 = vsyncpa [#allocation3], 1 }
 0x180   :  { %172 = vsyncpa [#allocation4], 1 }

</bundles_post_ra>
